<compile_context>
chip_gen: v7x
topology: tpu7x:2x2x1
jax: 0.10.0
libtpu: 0.0.40
codegen_flags: <defaults>
</compile_context>

<pallas_src>
import jax
import jax.numpy as jnp
import numpy as np
from jax.experimental import pallas as pl
from jax.experimental.pallas import tpu as pltpu

# ---------------- static sizes ------------------------------------------------
B = 2                            # batch
C, H, W = 3, 7, 7                # obs image, NCHW
IMG_FEAT = C * H * W             # 147
INSTR_DIM = 16                   # instr embedding dim
EMB = 32                         # encoder embedding
MEMORY_DIM = 32                  # semi_memory_size; memory_size = 2*MEMORY_DIM
MSG_LEN = 4                      # teacher.message_length
VOCAB = 8                        # teacher.vocab_size
MSG_FEAT = MSG_LEN * VOCAB       # 32
N_ACTIONS = 7                    # student action space

# ---- bf16 weight-slab row layout (128 lanes wide, 16-row-aligned blocks) -----
R_IMG = 0        # rows 0:147   [t_w_img | s_w_img]          cols 0:32 | 32:64
R_INS = 160      # rows 160:176 [t_w_instr | s_w_instr]      cols 0:32 | 32:64
R_TX = 176       # rows 176:208 teacher LSTM x->gates (32,128), gates i|f|g|o
R_TH = 208       # rows 208:240 teacher LSTM h->gates (32,128)
R_SX = 240       # rows 240:272 student LSTM x->gates (32,128)
R_SH = 272       # rows 272:304 student LSTM h->gates (32,128)
R_SMALL = 304    # rows 304:336 [t_w_comm | s_w_comm_in | s_w_head | 0] (32 each)
W_ROWS = 336
W_LANES = 128

# ---- f32 bias/constant slab (8 x 128) -----------------------------------------
#  row 0: [t_b_emb(32) | s_b_emb(32) | t_b_comm(32) | s_b_head(32)]
#  row 1: teacher LSTM gate bias (128)
#  row 2: student LSTM gate bias (128)
#  row 3: [actor mask(32) | value-lane mask(32) | message slot ids(32) | 0]
B_ROWS = 8

# ---- output slabs --------------------------------------------------------------
SLAB_TALK = 256                  # [comm | h_t | c_t | head | h_s | c_s | pad]
SLAB_SILENT = 128                # [head | h_s | c_s | pad]
O_COMM = 0
O_MT = 32                        # [h_t | c_t] -> memory_teacher
O_HEAD = 96                      # dist(7) then value(1)
O_MS = 128                       # [h_s | c_s] -> memory_student


# ---------------- in-kernel building blocks -----------------------------------
def _lstm_from_gates(gates, c):
    """gates: (B,128) pre-activations with bias, packed [i|f|g|o] (32 lanes each)."""
    i = jax.nn.sigmoid(gates[:, 0 * MEMORY_DIM:1 * MEMORY_DIM])
    f = jax.nn.sigmoid(gates[:, 1 * MEMORY_DIM:2 * MEMORY_DIM])
    g = jnp.tanh(      gates[:, 2 * MEMORY_DIM:3 * MEMORY_DIM])
    o = jax.nn.sigmoid(gates[:, 3 * MEMORY_DIM:4 * MEMORY_DIM])
    c_new = f * c + i * g
    h_new = o * jnp.tanh(c_new)
    return h_new, c_new                                      # (B,32) each


def _slot_softmax(logits, slot_id):
    """Exact per-slot softmax on lane-dense (B, MSG_LEN*VOCAB) logits.

    slot_id is a packed (1, 32) constant row (0,0,..,1,..,3). Per-slot max and
    per-slot sum are built with masked reductions at full lane width — no
    reshape/relayout, no approx reciprocal, robust to large logit spreads.
    """
    masks = [(slot_id == float(s)) for s in range(MSG_LEN)]          # (1,32) bool each
    m_full = jnp.zeros_like(logits)
    for msk in masks:
        m_s = jnp.max(jnp.where(msk, logits, -1e30), axis=-1, keepdims=True)   # (B,1)
        m_full = m_full + msk.astype(jnp.float32) * m_s
    e = jnp.exp(logits - m_full)
    d_full = jnp.zeros_like(logits)
    for msk in masks:
        d_s = jnp.sum(jnp.where(msk, e, 0.0), axis=-1, keepdims=True)           # (B,1)
        d_full = d_full + msk.astype(jnp.float32) * d_s
    return e / d_full                                                            # (B,32)


def _packed_head(raw, amask, vmask):
    """raw: (B,32) = [actor(7) | critic(1) | 0] -> [log-probs(7) | value(1) | 0]."""
    m = jnp.max(jnp.where(amask, raw, -jnp.inf), axis=-1, keepdims=True)
    lse = m + jnp.log(jnp.sum(jnp.where(amask, jnp.exp(raw - m), 0.0),
                              axis=-1, keepdims=True))
    return jnp.where(amask, raw - lse, jnp.where(vmask, raw, 0.0))


# ---------------- fused kernels ------------------------------------------------
def _fused_talk_kernel(obs_t_ref, obs_s_ref, instr_ref, mem_t_ref, mem_s_ref,
                       w_ref, b_ref, out_ref):
    f32, bf = jnp.float32, jnp.bfloat16
    nb = obs_t_ref.shape[0]

    # ---- weight / bias / constant views (depend only on the two slabs) -------
    w_img = w_ref[R_IMG:R_IMG + IMG_FEAT, :]        # (147,128) bf16
    w_ins = w_ref[R_INS:R_INS + INSTR_DIM, :]       # (16,128)
    w_tx = w_ref[R_TX:R_TX + EMB, :]                # (32,128)
    w_th = w_ref[R_TH:R_TH + MEMORY_DIM, :]         # (32,128)
    w_sx = w_ref[R_SX:R_SX + EMB, :]                # (32,128)
    w_sh = w_ref[R_SH:R_SH + MEMORY_DIM, :]         # (32,128)
    w_small = w_ref[R_SMALL:R_SMALL + MEMORY_DIM, :]  # (32,128): comm | comm_in | head | 0
    cb = b_ref[...]                                  # (8,128) f32
    b_enc_t, b_enc_s = cb[0:1, 0:32], cb[0:1, 32:64]
    b_comm, b_head = cb[0:1, 64:96], cb[0:1, 96:128]
    b_gt, b_gs = cb[1:2, :], cb[2:3, :]
    amask = cb[3:4, 0:32] > 0.5                      # actor lanes 0..6
    vmask = cb[3:4, 32:64] > 0.5                     # value lane 7
    slot_id = cb[3:4, 64:96]                         # message slot ids 0..3

    # ---- memories: split h | c in-kernel --------------------------------------
    mem_t = mem_t_ref[...]
    h_t0, c_t0 = mem_t[:, :MEMORY_DIM], mem_t[:, MEMORY_DIM:]
    mem_s = mem_s_ref[...]
    h_s0, c_s0 = mem_s[:, :MEMORY_DIM], mem_s[:, MEMORY_DIM:]

    # ---- comm-independent GEMMs (overlap the serial teacher chain) ------------
    e_ins = jnp.dot(instr_ref[...].astype(bf), w_ins, preferred_element_type=f32)
    e_img_t = jnp.dot(obs_t_ref[...].astype(bf), w_img, preferred_element_type=f32)
    e_img_s = jnp.dot(obs_s_ref[...].astype(bf), w_img, preferred_element_type=f32)
    gates_t_h = jnp.dot(h_t0.astype(bf), w_th, preferred_element_type=f32)
    gates_s_h = jnp.dot(h_s0.astype(bf), w_sh, preferred_element_type=f32)
    pre_s = e_img_s[:, EMB:2 * EMB] + e_ins[:, EMB:2 * EMB] + b_enc_s  # tanh deferred

    # ---- teacher chain: encoder -> LSTM -> per-slot message softmax -----------
    x_t = jnp.tanh(e_img_t[:, 0:EMB] + e_ins[:, 0:EMB] + b_enc_t)      # (B,32)
    gates_t = gates_t_h + jnp.dot(x_t.astype(bf), w_tx, preferred_element_type=f32) + b_gt
    h_t, c_t = _lstm_from_gates(gates_t, c_t0)
    logits = (jnp.dot(h_t.astype(bf), w_small,
                      preferred_element_type=f32)[:, 0:MSG_FEAT] + b_comm)
    comm = _slot_softmax(logits, slot_id)                               # (B,32)

    # ---- student: add comm contribution, LSTM, packed actor/critic head -------
    x_s = jnp.tanh(pre_s + jnp.dot(comm.astype(bf), w_small,
                                   preferred_element_type=f32)[:, MSG_FEAT:2 * MSG_FEAT])
    gates_s = gates_s_h + jnp.dot(x_s.astype(bf), w_sx, preferred_element_type=f32) + b_gs
    h_s, c_s = _lstm_from_gates(gates_s, c_s0)
    raw = (jnp.dot(h_s.astype(bf), w_small,
                   preferred_element_type=f32)[:, 2 * MSG_FEAT:3 * MSG_FEAT] + b_head)
    head = _packed_head(raw, amask, vmask)

    # ---- single lane-dense output slab (one unmasked store / one DMA) ---------
    pad = jnp.zeros((nb, SLAB_TALK - 6 * MEMORY_DIM), f32)
    out_ref[...] = jnp.concatenate([comm, h_t, c_t, head, h_s, c_s, pad], axis=-1)


def _student_only_kernel(obs_s_ref, instr_ref, mem_s_ref, w_ref, b_ref, out_ref):
    f32, bf = jnp.float32, jnp.bfloat16
    nb = obs_s_ref.shape[0]

    w_img = w_ref[R_IMG:R_IMG + IMG_FEAT, :]
    w_ins = w_ref[R_INS:R_INS + INSTR_DIM, :]
    w_sx = w_ref[R_SX:R_SX + EMB, :]
    w_sh = w_ref[R_SH:R_SH + MEMORY_DIM, :]
    w_small = w_ref[R_SMALL:R_SMALL + MEMORY_DIM, :]
    cb = b_ref[...]
    b_enc_s, b_head = cb[0:1, 32:64], cb[0:1, 96:128]
    b_gs = cb[2:3, :]
    amask = cb[3:4, 0:32] > 0.5
    vmask = cb[3:4, 32:64] > 0.5

    mem_s = mem_s_ref[...]
    h_s0, c_s0 = mem_s[:, :MEMORY_DIM], mem_s[:, MEMORY_DIM:]

    # talk=False: comm == zeros, so its encoder contribution is exactly 0.
    e_ins = jnp.dot(instr_ref[...].astype(bf), w_ins, preferred_element_type=f32)
    e_img = jnp.dot(obs_s_ref[...].astype(bf), w_img, preferred_element_type=f32)
    gates_h = jnp.dot(h_s0.astype(bf), w_sh, preferred_element_type=f32)
    x_s = jnp.tanh(e_img[:, EMB:2 * EMB] + e_ins[:, EMB:2 * EMB] + b_enc_s)
    gates = gates_h + jnp.dot(x_s.astype(bf), w_sx, preferred_element_type=f32) + b_gs
    h_s, c_s = _lstm_from_gates(gates, c_s0)
    raw = (jnp.dot(h_s.astype(bf), w_small,
                   preferred_element_type=f32)[:, 2 * MEMORY_DIM:3 * MEMORY_DIM] + b_head)
    head = _packed_head(raw, amask, vmask)

    pad = jnp.zeros((nb, SLAB_SILENT - 3 * MEMORY_DIM), f32)
    out_ref[...] = jnp.concatenate([head, h_s, c_s, pad], axis=-1)


# ---------------- pallas_call wrappers -----------------------------------------
def _vmem():
    return pl.BlockSpec(memory_space=pltpu.MemorySpace.VMEM)


@jax.jit
def _forward_talk(obs_t, obs_s, instr, mem_t, mem_s, w_slab, b_slab):
    nb = obs_t.shape[0]
    args = (obs_t.reshape(nb, -1), obs_s.reshape(nb, -1), instr, mem_t, mem_s,
            w_slab, b_slab)
    out = pl.pallas_call(
        _fused_talk_kernel,
        out_shape=jax.ShapeDtypeStruct((nb, SLAB_TALK), jnp.float32),
        in_specs=[_vmem()] * len(args),
        out_specs=_vmem(),
    )(*args)
    comm = out[:, O_COMM:O_COMM + MSG_FEAT].reshape(nb, MSG_LEN, VOCAB)
    mem_t_new = out[:, O_MT:O_MT + 2 * MEMORY_DIM]
    dist = out[:, O_HEAD:O_HEAD + N_ACTIONS]
    value = out[:, O_HEAD + N_ACTIONS:O_HEAD + N_ACTIONS + 1]
    mem_s_new = out[:, O_MS:O_MS + 2 * MEMORY_DIM]
    return dist, value, mem_s_new, mem_t_new, comm


@jax.jit
def _forward_silent(obs_s, instr, mem_s, w_slab, b_slab):
    nb = obs_s.shape[0]
    args = (obs_s.reshape(nb, -1), instr, mem_s, w_slab, b_slab)
    out = pl.pallas_call(
        _student_only_kernel,
        out_shape=jax.ShapeDtypeStruct((nb, SLAB_SILENT), jnp.float32),
        in_specs=[_vmem()] * len(args),
        out_specs=_vmem(),
    )(*args)
    dist = out[:, 0:N_ACTIONS]
    value = out[:, N_ACTIONS:N_ACTIONS + 1]
    mem_s_new = out[:, 32:32 + 2 * MEMORY_DIM]
    return dist, value, mem_s_new


# ---------------- parameter construction & packing ------------------------------
def init_raw_params(key):
    names_shapes = [
        # teacher
        ('t_w_img',    (IMG_FEAT, EMB)),
        ('t_w_instr',  (INSTR_DIM, EMB)),
        ('t_b_emb',    (1, EMB)),
        ('t_w_x',      (EMB, 4 * MEMORY_DIM)),
        ('t_w_h',      (MEMORY_DIM, 4 * MEMORY_DIM)),
        ('t_b_lstm',   (1, 4 * MEMORY_DIM)),
        ('t_w_comm',   (MEMORY_DIM, MSG_FEAT)),
        ('t_b_comm',   (1, MSG_FEAT)),
        # student
        ('s_w_img',     (IMG_FEAT, EMB)),
        ('s_w_comm_in', (MSG_FEAT, EMB)),
        ('s_w_instr',   (INSTR_DIM, EMB)),
        ('s_b_emb',     (1, EMB)),
        ('s_w_x',       (EMB, 4 * MEMORY_DIM)),
        ('s_w_h',       (MEMORY_DIM, 4 * MEMORY_DIM)),
        ('s_b_lstm',    (1, 4 * MEMORY_DIM)),
        ('s_w_actor',   (MEMORY_DIM, N_ACTIONS)),
        ('s_b_actor',   (1, N_ACTIONS)),
        ('s_w_critic',  (MEMORY_DIM, 1)),
        ('s_b_critic',  (1, 1)),
    ]
    keys = jax.random.split(key, len(names_shapes))
    return {name: 0.1 * jax.random.normal(k, shape, jnp.float32)
            for k, (name, shape) in zip(keys, names_shapes)}


def pack_params(p):
    """Pack all weights into one bf16 slab + one f32 bias/constant slab."""
    w = jnp.zeros((W_ROWS, W_LANES), jnp.float32)
    w = w.at[R_IMG:R_IMG + IMG_FEAT, 0:EMB].set(p['t_w_img'])
    w = w.at[R_IMG:R_IMG + IMG_FEAT, EMB:2 * EMB].set(p['s_w_img'])
    w = w.at[R_INS:R_INS + INSTR_DIM, 0:EMB].set(p['t_w_instr'])
    w = w.at[R_INS:R_INS + INSTR_DIM, EMB:2 * EMB].set(p['s_w_instr'])
    w = w.at[R_TX:R_TX + EMB, :].set(p['t_w_x'])
    w = w.at[R_TH:R_TH + MEMORY_DIM, :].set(p['t_w_h'])
    w = w.at[R_SX:R_SX + EMB, :].set(p['s_w_x'])
    w = w.at[R_SH:R_SH + MEMORY_DIM, :].set(p['s_w_h'])
    w = w.at[R_SMALL:R_SMALL + MEMORY_DIM, 0:MSG_FEAT].set(p['t_w_comm'])
    w = w.at[R_SMALL:R_SMALL + MSG_FEAT, MSG_FEAT:2 * MSG_FEAT].set(p['s_w_comm_in'])
    w = w.at[R_SMALL:R_SMALL + MEMORY_DIM,
             2 * MSG_FEAT:2 * MSG_FEAT + N_ACTIONS].set(p['s_w_actor'])
    w = w.at[R_SMALL:R_SMALL + MEMORY_DIM,
             2 * MSG_FEAT + N_ACTIONS:2 * MSG_FEAT + N_ACTIONS + 1].set(p['s_w_critic'])

    b = jnp.zeros((B_ROWS, W_LANES), jnp.float32)
    b = b.at[0, 0:EMB].set(p['t_b_emb'][0])
    b = b.at[0, EMB:2 * EMB].set(p['s_b_emb'][0])
    b = b.at[0, 64:64 + MSG_FEAT].set(p['t_b_comm'][0])
    b = b.at[0, 96:96 + N_ACTIONS].set(p['s_b_actor'][0])
    b = b.at[0, 96 + N_ACTIONS].set(p['s_b_critic'][0, 0])
    b = b.at[1, :].set(p['t_b_lstm'][0])
    b = b.at[2, :].set(p['s_b_lstm'][0])
    # hoisted constants: actor mask, value-lane mask, message slot ids
    b = b.at[3, 0:N_ACTIONS].set(1.0)
    b = b.at[3, 32 + N_ACTIONS].set(1.0)
    b = b.at[3, 64:64 + MSG_FEAT].set(
        (np.arange(MSG_FEAT) // VOCAB).astype(np.float32))

    return {'w': w.astype(jnp.bfloat16), 'b': b}


# ---------------- JointModel -----------------------------------------------------
class JointModel:
    """Pallas port of the babyai JointModel (teacher/student wiring)."""

    def __init__(self, raw_params, memory_dim=MEMORY_DIM):
        self.raw_params = raw_params
        self.kernel_params = pack_params(raw_params)
        self.memory_dim = memory_dim
        self.message_length = MSG_LEN
        self.vocab_size = VOCAB

    @property
    def memory_size(self):
        return 2 * self.semi_memory_size

    @property
    def semi_memory_size(self):
        return self.memory_dim

    def forward(self, obs_teacher_image, obs_student_image,
                memory_teacher, memory_student, talk=False, instr_embedding=None):
        nb = obs_teacher_image.shape[0]
        if instr_embedding is None:
            instr_embedding = jnp.zeros((nb, INSTR_DIM), jnp.float32)
        kp = self.kernel_params
        if talk:
            dist, value, mem_s, mem_t, comm = _forward_talk(
                obs_teacher_image, obs_student_image, instr_embedding,
                memory_teacher, memory_student, kp['w'], kp['b'])
            memory_teacher = mem_t
        else:
            comm = jnp.zeros((nb, self.message_length, self.vocab_size), jnp.float32)
            dist, value, mem_s = _forward_silent(
                obs_student_image, instr_embedding, memory_student,
                kp['w'], kp['b'])
        model_results = {'dist': dist, 'value': value, 'memory': mem_s,
                         'memory_teacher': memory_teacher}
        return model_results, comm


# ---------------- pure-JAX reference (semantics check) ----------------------------
def _ref_lstm(x, h, c, w_x, w_h, b):
    gates = x @ w_x + h @ w_h + b
    i = jax.nn.sigmoid(gates[:, 0 * MEMORY_DIM:1 * MEMORY_DIM])
    f = jax.nn.sigmoid(gates[:, 1 * MEMORY_DIM:2 * MEMORY_DIM])
    g = jnp.tanh(gates[:, 2 * MEMORY_DIM:3 * MEMORY_DIM])
    o = jax.nn.sigmoid(gates[:, 3 * MEMORY_DIM:4 * MEMORY_DIM])
    c_new = f * c + i * g
    return o * jnp.tanh(c_new), c_new


def reference_forward(p, obs_t, obs_s, mem_t, mem_s, instr, talk):
    nb = obs_t.shape[0]
    if talk:
        x = jnp.tanh(obs_t.reshape(nb, -1) @ p['t_w_img']
                     + instr @ p['t_w_instr'] + p['t_b_emb'])
        h, c = _ref_lstm(x, mem_t[:, :MEMORY_DIM], mem_t[:, MEMORY_DIM:],
                         p['t_w_x'], p['t_w_h'], p['t_b_lstm'])
        mem_t = jnp.concatenate([h, c], axis=-1)
        logits = (h @ p['t_w_comm'] + p['t_b_comm']).reshape(nb, MSG_LEN, VOCAB)
        comm = jax.nn.softmax(logits, axis=-1)
    else:
        comm = jnp.zeros((nb, MSG_LEN, VOCAB), jnp.float32)
    x = jnp.tanh(obs_s.reshape(nb, -1) @ p['s_w_img']
                 + comm.reshape(nb, MSG_FEAT) @ p['s_w_comm_in']
                 + instr @ p['s_w_instr'] + p['s_b_emb'])
    h, c = _ref_lstm(x, mem_s[:, :MEMORY_DIM], mem_s[:, MEMORY_DIM:],
                     p['s_w_x'], p['s_w_h'], p['s_b_lstm'])
    dist = jax.nn.log_softmax(h @ p['s_w_actor'] + p['s_b_actor'], axis=-1)
    value = h @ p['s_w_critic'] + p['s_b_critic']
    return ({'dist': dist, 'value': value,
             'memory': jnp.concatenate([h, c], axis=-1),
             'memory_teacher': mem_t}, comm)


# ---------------- demo -------------------------------------------------------------
if __name__ == "__main__":
    root = jax.random.PRNGKey(0)
    k_par, k_ti, k_si, k_mt, k_ms, k_in = jax.random.split(root, 6)

    raw = init_raw_params(k_par)
    model = JointModel(raw, memory_dim=MEMORY_DIM)

    obs_teacher = jax.random.uniform(k_ti, (B, C, H, W), jnp.float32)   # NCHW
    obs_student = jax.random.uniform(k_si, (B, C, H, W), jnp.float32)   # NCHW
    memory_teacher = 0.1 * jax.random.normal(k_mt, (B, model.memory_size), jnp.float32)
    memory_student = 0.1 * jax.random.normal(k_ms, (B, model.memory_size), jnp.float32)
    instr_embedding = 0.1 * jax.random.normal(k_in, (B, INSTR_DIM), jnp.float32)

    # talk=True (fused teacher+student kernel) and talk=False (student-only kernel)
    results_talk, comm_talk = model.forward(
        obs_teacher, obs_student, memory_teacher, memory_student,
        talk=True, instr_embedding=instr_embedding)
    results_silent, comm_silent = model.forward(
        obs_teacher, obs_student, memory_teacher, memory_student,
        talk=False, instr_embedding=instr_embedding)
    jax.block_until_ready((results_talk, comm_talk, results_silent, comm_silent))

    # shape contract
    assert comm_talk.shape == (B, MSG_LEN, VOCAB)
    assert results_talk['dist'].shape == (B, N_ACTIONS)
    assert results_talk['value'].shape == (B, 1)
    assert results_talk['memory'].shape == (B, 2 * MEMORY_DIM)
    assert results_talk['memory_teacher'].shape == (B, 2 * MEMORY_DIM)
    assert bool(jnp.all(comm_silent == 0.0))
    assert bool(jnp.all(results_silent['memory_teacher'] == memory_teacher))

    # numerics vs. pure-JAX f32 reference (bf16 MXU inputs stay well inside 2e-2)
    for talk in (True, False):
        got, comm_got = model.forward(obs_teacher, obs_student, memory_teacher,
                                      memory_student, talk=talk,
                                      instr_embedding=instr_embedding)
        want, comm_want = reference_forward(raw, obs_teacher, obs_student,
                                            memory_teacher, memory_student,
                                            instr_embedding, talk)
        for name in ('dist', 'value', 'memory', 'memory_teacher'):
            np.testing.assert_allclose(np.asarray(got[name]), np.asarray(want[name]),
                                       rtol=2e-2, atol=2e-2)
        np.testing.assert_allclose(np.asarray(comm_got), np.asarray(comm_want),
                                   rtol=2e-2, atol=2e-2)

    print("KERNEL_OK")
</pallas_src>

<mosaic_0001>
module attributes {stable_mosaic.version = 11 : i64} {
  func.func @_fused_talk_kernel(%arg0: memref<2x147xf32, #tpu.memory_space<vmem>>, %arg1: memref<2x147xf32, #tpu.memory_space<vmem>>, %arg2: memref<2x16xf32, #tpu.memory_space<vmem>>, %arg3: memref<2x64xf32, #tpu.memory_space<vmem>>, %arg4: memref<2x64xf32, #tpu.memory_space<vmem>>, %arg5: memref<336x128xbf16, #tpu.memory_space<vmem>>, %arg6: memref<8x128xf32, #tpu.memory_space<vmem>>, %arg7: memref<2x256xf32, #tpu.memory_space<vmem>>) attributes {dimension_semantics = [], scalar_prefetch = 0 : i64, scratch_operands = 0 : i64, tpu.core_type = #tpu.core_type<tc>} {
    %c0 = arith.constant 0 : index
    %c0_0 = arith.constant 0 : index
    %0 = vector.load %arg5[%c0, %c0_0] : memref<336x128xbf16, #tpu.memory_space<vmem>>, vector<147x128xbf16>
    %c160 = arith.constant 160 : index
    %c0_1 = arith.constant 0 : index
    %1 = vector.load %arg5[%c160, %c0_1] : memref<336x128xbf16, #tpu.memory_space<vmem>>, vector<16x128xbf16>
    %c176 = arith.constant 176 : index
    %c0_2 = arith.constant 0 : index
    %2 = vector.load %arg5[%c176, %c0_2] : memref<336x128xbf16, #tpu.memory_space<vmem>>, vector<32x128xbf16>
    %c208 = arith.constant 208 : index
    %c0_3 = arith.constant 0 : index
    %3 = vector.load %arg5[%c208, %c0_3] : memref<336x128xbf16, #tpu.memory_space<vmem>>, vector<32x128xbf16>
    %c240 = arith.constant 240 : index
    %c0_4 = arith.constant 0 : index
    %4 = vector.load %arg5[%c240, %c0_4] : memref<336x128xbf16, #tpu.memory_space<vmem>>, vector<32x128xbf16>
    %c272 = arith.constant 272 : index
    %c0_5 = arith.constant 0 : index
    %5 = vector.load %arg5[%c272, %c0_5] : memref<336x128xbf16, #tpu.memory_space<vmem>>, vector<32x128xbf16>
    %c304 = arith.constant 304 : index
    %c0_6 = arith.constant 0 : index
    %6 = vector.load %arg5[%c304, %c0_6] : memref<336x128xbf16, #tpu.memory_space<vmem>>, vector<32x128xbf16>
    %c0_7 = arith.constant 0 : index
    %c0_8 = arith.constant 0 : index
    %7 = vector.load %arg6[%c0_7, %c0_8] : memref<8x128xf32, #tpu.memory_space<vmem>>, vector<8x128xf32>
    %8 = vector.extract_strided_slice %7 {offsets = [0, 0], sizes = [1, 32], strides = [1, 1]} : vector<8x128xf32> to vector<1x32xf32>
    %9 = vector.extract_strided_slice %7 {offsets = [0, 32], sizes = [1, 32], strides = [1, 1]} : vector<8x128xf32> to vector<1x32xf32>
    %10 = vector.extract_strided_slice %7 {offsets = [0, 64], sizes = [1, 32], strides = [1, 1]} : vector<8x128xf32> to vector<1x32xf32>
    %11 = vector.extract_strided_slice %7 {offsets = [0, 96], sizes = [1, 32], strides = [1, 1]} : vector<8x128xf32> to vector<1x32xf32>
    %12 = vector.extract_strided_slice %7 {offsets = [1, 0], sizes = [1, 128], strides = [1, 1]} : vector<8x128xf32> to vector<1x128xf32>
    %13 = vector.extract_strided_slice %7 {offsets = [2, 0], sizes = [1, 128], strides = [1, 1]} : vector<8x128xf32> to vector<1x128xf32>
    %14 = vector.extract_strided_slice %7 {offsets = [3, 0], sizes = [1, 32], strides = [1, 1]} : vector<8x128xf32> to vector<1x32xf32>
    %cst = arith.constant 5.000000e-01 : f32
    %15 = vector.broadcast %cst : f32 to vector<1x32xf32>
    %16 = arith.cmpf ogt, %14, %15 : vector<1x32xf32>
    %17 = vector.extract_strided_slice %7 {offsets = [3, 32], sizes = [1, 32], strides = [1, 1]} : vector<8x128xf32> to vector<1x32xf32>
    %cst_9 = arith.constant 5.000000e-01 : f32
    %18 = vector.broadcast %cst_9 : f32 to vector<1x32xf32>
    %19 = arith.cmpf ogt, %17, %18 : vector<1x32xf32>
    %20 = vector.extract_strided_slice %7 {offsets = [3, 64], sizes = [1, 32], strides = [1, 1]} : vector<8x128xf32> to vector<1x32xf32>
    %c0_10 = arith.constant 0 : index
    %c0_11 = arith.constant 0 : index
    %21 = vector.load %arg3[%c0_10, %c0_11] : memref<2x64xf32, #tpu.memory_space<vmem>>, vector<2x64xf32>
    %22 = vector.extract_strided_slice %21 {offsets = [0, 0], sizes = [2, 32], strides = [1, 1]} : vector<2x64xf32> to vector<2x32xf32>
    %23 = vector.extract_strided_slice %21 {offsets = [0, 32], sizes = [2, 32], strides = [1, 1]} : vector<2x64xf32> to vector<2x32xf32>
    %c0_12 = arith.constant 0 : index
    %c0_13 = arith.constant 0 : index
    %24 = vector.load %arg4[%c0_12, %c0_13] : memref<2x64xf32, #tpu.memory_space<vmem>>, vector<2x64xf32>
    %25 = vector.extract_strided_slice %24 {offsets = [0, 0], sizes = [2, 32], strides = [1, 1]} : vector<2x64xf32> to vector<2x32xf32>
    %26 = vector.extract_strided_slice %24 {offsets = [0, 32], sizes = [2, 32], strides = [1, 1]} : vector<2x64xf32> to vector<2x32xf32>
    %c0_14 = arith.constant 0 : index
    %c0_15 = arith.constant 0 : index
    %27 = vector.load %arg2[%c0_14, %c0_15] : memref<2x16xf32, #tpu.memory_space<vmem>>, vector<2x16xf32>
    %28 = arith.truncf %27 : vector<2x16xf32> to vector<2x16xbf16>
    %cst_16 = arith.constant dense<0.000000e+00> : vector<2x128xf32>
    %29 = tpu.matmul %28, %1, %cst_16 {dimension_numbers = #tpu.dot_dimension_numbers<[1], [0], [0], [1], [0, 0, 1, 1], [], []>} : vector<2x16xbf16>, vector<16x128xbf16>, vector<2x128xf32> -> vector<2x128xf32>
    %c0_17 = arith.constant 0 : index
    %c0_18 = arith.constant 0 : index
    %30 = vector.load %arg0[%c0_17, %c0_18] : memref<2x147xf32, #tpu.memory_space<vmem>>, vector<2x147xf32>
    %31 = arith.truncf %30 : vector<2x147xf32> to vector<2x147xbf16>
    %cst_19 = arith.constant dense<0.000000e+00> : vector<2x128xf32>
    %32 = tpu.matmul %31, %0, %cst_19 {dimension_numbers = #tpu.dot_dimension_numbers<[1], [0], [0], [1], [0, 0, 1, 1], [], []>} : vector<2x147xbf16>, vector<147x128xbf16>, vector<2x128xf32> -> vector<2x128xf32>
    %c0_20 = arith.constant 0 : index
    %c0_21 = arith.constant 0 : index
    %33 = vector.load %arg1[%c0_20, %c0_21] : memref<2x147xf32, #tpu.memory_space<vmem>>, vector<2x147xf32>
    %34 = arith.truncf %33 : vector<2x147xf32> to vector<2x147xbf16>
    %cst_22 = arith.constant dense<0.000000e+00> : vector<2x128xf32>
    %35 = tpu.matmul %34, %0, %cst_22 {dimension_numbers = #tpu.dot_dimension_numbers<[1], [0], [0], [1], [0, 0, 1, 1], [], []>} : vector<2x147xbf16>, vector<147x128xbf16>, vector<2x128xf32> -> vector<2x128xf32>
    %36 = arith.truncf %22 : vector<2x32xf32> to vector<2x32xbf16>
    %cst_23 = arith.constant dense<0.000000e+00> : vector<2x128xf32>
    %37 = tpu.matmul %36, %3, %cst_23 {dimension_numbers = #tpu.dot_dimension_numbers<[1], [0], [0], [1], [0, 0, 1, 1], [], []>} : vector<2x32xbf16>, vector<32x128xbf16>, vector<2x128xf32> -> vector<2x128xf32>
    %38 = arith.truncf %25 : vector<2x32xf32> to vector<2x32xbf16>
    %cst_24 = arith.constant dense<0.000000e+00> : vector<2x128xf32>
    %39 = tpu.matmul %38, %5, %cst_24 {dimension_numbers = #tpu.dot_dimension_numbers<[1], [0], [0], [1], [0, 0, 1, 1], [], []>} : vector<2x32xbf16>, vector<32x128xbf16>, vector<2x128xf32> -> vector<2x128xf32>
    %40 = vector.extract_strided_slice %35 {offsets = [0, 32], sizes = [2, 32], strides = [1, 1]} : vector<2x128xf32> to vector<2x32xf32>
    %41 = vector.extract_strided_slice %29 {offsets = [0, 32], sizes = [2, 32], strides = [1, 1]} : vector<2x128xf32> to vector<2x32xf32>
    %42 = arith.addf %40, %41 : vector<2x32xf32>
    %43 = vector.broadcast %9 : vector<1x32xf32> to vector<2x32xf32>
    %44 = arith.addf %42, %43 : vector<2x32xf32>
    %45 = vector.extract_strided_slice %32 {offsets = [0, 0], sizes = [2, 32], strides = [1, 1]} : vector<2x128xf32> to vector<2x32xf32>
    %46 = vector.extract_strided_slice %29 {offsets = [0, 0], sizes = [2, 32], strides = [1, 1]} : vector<2x128xf32> to vector<2x32xf32>
    %47 = arith.addf %45, %46 : vector<2x32xf32>
    %48 = vector.broadcast %8 : vector<1x32xf32> to vector<2x32xf32>
    %49 = arith.addf %47, %48 : vector<2x32xf32>
    %50 = math.tanh %49 : vector<2x32xf32>
    %51 = arith.truncf %50 : vector<2x32xf32> to vector<2x32xbf16>
    %cst_25 = arith.constant dense<0.000000e+00> : vector<2x128xf32>
    %52 = tpu.matmul %51, %2, %cst_25 {dimension_numbers = #tpu.dot_dimension_numbers<[1], [0], [0], [1], [0, 0, 1, 1], [], []>} : vector<2x32xbf16>, vector<32x128xbf16>, vector<2x128xf32> -> vector<2x128xf32>
    %53 = arith.addf %37, %52 : vector<2x128xf32>
    %54 = vector.broadcast %12 : vector<1x128xf32> to vector<2x128xf32>
    %55 = arith.addf %53, %54 : vector<2x128xf32>
    %56 = vector.extract_strided_slice %55 {offsets = [0, 0], sizes = [2, 32], strides = [1, 1]} : vector<2x128xf32> to vector<2x32xf32>
    %57 = arith.negf %56 : vector<2x32xf32>
    %58 = math.exp %57 : vector<2x32xf32>
    %cst_26 = arith.constant 1.000000e+00 : f32
    %59 = vector.broadcast %cst_26 : f32 to vector<2x32xf32>
    %60 = arith.addf %59, %58 : vector<2x32xf32>
    %61 = arith.divf %59, %60 : vector<2x32xf32>
    %62 = vector.extract_strided_slice %55 {offsets = [0, 32], sizes = [2, 32], strides = [1, 1]} : vector<2x128xf32> to vector<2x32xf32>
    %63 = arith.negf %62 : vector<2x32xf32>
    %64 = math.exp %63 : vector<2x32xf32>
    %cst_27 = arith.constant 1.000000e+00 : f32
    %65 = vector.broadcast %cst_27 : f32 to vector<2x32xf32>
    %66 = arith.addf %65, %64 : vector<2x32xf32>
    %67 = arith.divf %65, %66 : vector<2x32xf32>
    %68 = vector.extract_strided_slice %55 {offsets = [0, 64], sizes = [2, 32], strides = [1, 1]} : vector<2x128xf32> to vector<2x32xf32>
    %69 = math.tanh %68 : vector<2x32xf32>
    %70 = vector.extract_strided_slice %55 {offsets = [0, 96], sizes = [2, 32], strides = [1, 1]} : vector<2x128xf32> to vector<2x32xf32>
    %71 = arith.negf %70 : vector<2x32xf32>
    %72 = math.exp %71 : vector<2x32xf32>
    %cst_28 = arith.constant 1.000000e+00 : f32
    %73 = vector.broadcast %cst_28 : f32 to vector<2x32xf32>
    %74 = arith.addf %73, %72 : vector<2x32xf32>
    %75 = arith.divf %73, %74 : vector<2x32xf32>
    %76 = arith.mulf %67, %23 : vector<2x32xf32>
    %77 = arith.mulf %61, %69 : vector<2x32xf32>
    %78 = arith.addf %76, %77 : vector<2x32xf32>
    %79 = math.tanh %78 : vector<2x32xf32>
    %80 = arith.mulf %75, %79 : vector<2x32xf32>
    %81 = arith.truncf %80 : vector<2x32xf32> to vector<2x32xbf16>
    %cst_29 = arith.constant dense<0.000000e+00> : vector<2x128xf32>
    %82 = tpu.matmul %81, %6, %cst_29 {dimension_numbers = #tpu.dot_dimension_numbers<[1], [0], [0], [1], [0, 0, 1, 1], [], []>} : vector<2x32xbf16>, vector<32x128xbf16>, vector<2x128xf32> -> vector<2x128xf32>
    %83 = vector.extract_strided_slice %82 {offsets = [0, 0], sizes = [2, 32], strides = [1, 1]} : vector<2x128xf32> to vector<2x32xf32>
    %84 = vector.broadcast %10 : vector<1x32xf32> to vector<2x32xf32>
    %85 = arith.addf %83, %84 : vector<2x32xf32>
    %cst_30 = arith.constant 0.000000e+00 : f32
    %86 = vector.broadcast %cst_30 : f32 to vector<1x32xf32>
    %87 = arith.cmpf oeq, %20, %86 : vector<1x32xf32>
    %cst_31 = arith.constant 1.000000e+00 : f32
    %88 = vector.broadcast %cst_31 : f32 to vector<1x32xf32>
    %89 = arith.cmpf oeq, %20, %88 : vector<1x32xf32>
    %cst_32 = arith.constant 2.000000e+00 : f32
    %90 = vector.broadcast %cst_32 : f32 to vector<1x32xf32>
    %91 = arith.cmpf oeq, %20, %90 : vector<1x32xf32>
    %cst_33 = arith.constant 3.000000e+00 : f32
    %92 = vector.broadcast %cst_33 : f32 to vector<1x32xf32>
    %93 = arith.cmpf oeq, %20, %92 : vector<1x32xf32>
    %cst_34 = arith.constant 0.000000e+00 : f32
    %94 = vector.broadcast %cst_34 : f32 to vector<2x32xf32>
    %cst_35 = arith.constant -1.000000e+30 : f32
    %95 = vector.shape_cast %87 : vector<1x32xi1> to vector<1x32xi1>
    %96 = vector.broadcast %95 : vector<1x32xi1> to vector<2x32xi1>
    %97 = vector.broadcast %cst_35 : f32 to vector<2x32xf32>
    %98 = arith.select %96, %85, %97 : vector<2x32xi1>, vector<2x32xf32>
    %cst_36 = arith.constant dense<0xFF800000> : vector<2xf32>
    %99 = vector.multi_reduction <maximumf>, %98, %cst_36 [1] : vector<2x32xf32> to vector<2xf32>
    %100 = vector.shape_cast %99 : vector<2xf32> to vector<2x1xf32>
    %101 = arith.extui %87 : vector<1x32xi1> to vector<1x32xi32>
    %102 = arith.sitofp %101 : vector<1x32xi32> to vector<1x32xf32>
    %103 = vector.broadcast %102 : vector<1x32xf32> to vector<2x32xf32>
    %104 = vector.broadcast %100 : vector<2x1xf32> to vector<2x32xf32>
    %105 = arith.mulf %103, %104 : vector<2x32xf32>
    %106 = arith.addf %94, %105 : vector<2x32xf32>
    %cst_37 = arith.constant -1.000000e+30 : f32
    %107 = vector.shape_cast %89 : vector<1x32xi1> to vector<1x32xi1>
    %108 = vector.broadcast %107 : vector<1x32xi1> to vector<2x32xi1>
    %109 = vector.broadcast %cst_37 : f32 to vector<2x32xf32>
    %110 = arith.select %108, %85, %109 : vector<2x32xi1>, vector<2x32xf32>
    %cst_38 = arith.constant dense<0xFF800000> : vector<2xf32>
    %111 = vector.multi_reduction <maximumf>, %110, %cst_38 [1] : vector<2x32xf32> to vector<2xf32>
    %112 = vector.shape_cast %111 : vector<2xf32> to vector<2x1xf32>
    %113 = arith.extui %89 : vector<1x32xi1> to vector<1x32xi32>
    %114 = arith.sitofp %113 : vector<1x32xi32> to vector<1x32xf32>
    %115 = vector.broadcast %114 : vector<1x32xf32> to vector<2x32xf32>
    %116 = vector.broadcast %112 : vector<2x1xf32> to vector<2x32xf32>
    %117 = arith.mulf %115, %116 : vector<2x32xf32>
    %118 = arith.addf %106, %117 : vector<2x32xf32>
    %cst_39 = arith.constant -1.000000e+30 : f32
    %119 = vector.shape_cast %91 : vector<1x32xi1> to vector<1x32xi1>
    %120 = vector.broadcast %119 : vector<1x32xi1> to vector<2x32xi1>
    %121 = vector.broadcast %cst_39 : f32 to vector<2x32xf32>
    %122 = arith.select %120, %85, %121 : vector<2x32xi1>, vector<2x32xf32>
    %cst_40 = arith.constant dense<0xFF800000> : vector<2xf32>
    %123 = vector.multi_reduction <maximumf>, %122, %cst_40 [1] : vector<2x32xf32> to vector<2xf32>
    %124 = vector.shape_cast %123 : vector<2xf32> to vector<2x1xf32>
    %125 = arith.extui %91 : vector<1x32xi1> to vector<1x32xi32>
    %126 = arith.sitofp %125 : vector<1x32xi32> to vector<1x32xf32>
    %127 = vector.broadcast %126 : vector<1x32xf32> to vector<2x32xf32>
    %128 = vector.broadcast %124 : vector<2x1xf32> to vector<2x32xf32>
    %129 = arith.mulf %127, %128 : vector<2x32xf32>
    %130 = arith.addf %118, %129 : vector<2x32xf32>
    %cst_41 = arith.constant -1.000000e+30 : f32
    %131 = vector.shape_cast %93 : vector<1x32xi1> to vector<1x32xi1>
    %132 = vector.broadcast %131 : vector<1x32xi1> to vector<2x32xi1>
    %133 = vector.broadcast %cst_41 : f32 to vector<2x32xf32>
    %134 = arith.select %132, %85, %133 : vector<2x32xi1>, vector<2x32xf32>
    %cst_42 = arith.constant dense<0xFF800000> : vector<2xf32>
    %135 = vector.multi_reduction <maximumf>, %134, %cst_42 [1] : vector<2x32xf32> to vector<2xf32>
    %136 = vector.shape_cast %135 : vector<2xf32> to vector<2x1xf32>
    %137 = arith.extui %93 : vector<1x32xi1> to vector<1x32xi32>
    %138 = arith.sitofp %137 : vector<1x32xi32> to vector<1x32xf32>
    %139 = vector.broadcast %138 : vector<1x32xf32> to vector<2x32xf32>
    %140 = vector.broadcast %136 : vector<2x1xf32> to vector<2x32xf32>
    %141 = arith.mulf %139, %140 : vector<2x32xf32>
    %142 = arith.addf %130, %141 : vector<2x32xf32>
    %143 = arith.subf %85, %142 : vector<2x32xf32>
    %144 = math.exp %143 : vector<2x32xf32>
    %cst_43 = arith.constant 0.000000e+00 : f32
    %145 = vector.broadcast %cst_43 : f32 to vector<2x32xf32>
    %cst_44 = arith.constant 0.000000e+00 : f32
    %146 = vector.shape_cast %87 : vector<1x32xi1> to vector<1x32xi1>
    %147 = vector.broadcast %146 : vector<1x32xi1> to vector<2x32xi1>
    %148 = vector.broadcast %cst_44 : f32 to vector<2x32xf32>
    %149 = arith.select %147, %144, %148 : vector<2x32xi1>, vector<2x32xf32>
    %cst_45 = arith.constant dense<0.000000e+00> : vector<2xf32>
    %150 = vector.multi_reduction <add>, %149, %cst_45 [1] : vector<2x32xf32> to vector<2xf32>
    %151 = vector.shape_cast %150 : vector<2xf32> to vector<2x1xf32>
    %152 = arith.extui %87 : vector<1x32xi1> to vector<1x32xi32>
    %153 = arith.sitofp %152 : vector<1x32xi32> to vector<1x32xf32>
    %154 = vector.broadcast %153 : vector<1x32xf32> to vector<2x32xf32>
    %155 = vector.broadcast %151 : vector<2x1xf32> to vector<2x32xf32>
    %156 = arith.mulf %154, %155 : vector<2x32xf32>
    %157 = arith.addf %145, %156 : vector<2x32xf32>
    %cst_46 = arith.constant 0.000000e+00 : f32
    %158 = vector.shape_cast %89 : vector<1x32xi1> to vector<1x32xi1>
    %159 = vector.broadcast %158 : vector<1x32xi1> to vector<2x32xi1>
    %160 = vector.broadcast %cst_46 : f32 to vector<2x32xf32>
    %161 = arith.select %159, %144, %160 : vector<2x32xi1>, vector<2x32xf32>
    %cst_47 = arith.constant dense<0.000000e+00> : vector<2xf32>
    %162 = vector.multi_reduction <add>, %161, %cst_47 [1] : vector<2x32xf32> to vector<2xf32>
    %163 = vector.shape_cast %162 : vector<2xf32> to vector<2x1xf32>
    %164 = arith.extui %89 : vector<1x32xi1> to vector<1x32xi32>
    %165 = arith.sitofp %164 : vector<1x32xi32> to vector<1x32xf32>
    %166 = vector.broadcast %165 : vector<1x32xf32> to vector<2x32xf32>
    %167 = vector.broadcast %163 : vector<2x1xf32> to vector<2x32xf32>
    %168 = arith.mulf %166, %167 : vector<2x32xf32>
    %169 = arith.addf %157, %168 : vector<2x32xf32>
    %cst_48 = arith.constant 0.000000e+00 : f32
    %170 = vector.shape_cast %91 : vector<1x32xi1> to vector<1x32xi1>
    %171 = vector.broadcast %170 : vector<1x32xi1> to vector<2x32xi1>
    %172 = vector.broadcast %cst_48 : f32 to vector<2x32xf32>
    %173 = arith.select %171, %144, %172 : vector<2x32xi1>, vector<2x32xf32>
    %cst_49 = arith.constant dense<0.000000e+00> : vector<2xf32>
    %174 = vector.multi_reduction <add>, %173, %cst_49 [1] : vector<2x32xf32> to vector<2xf32>
    %175 = vector.shape_cast %174 : vector<2xf32> to vector<2x1xf32>
    %176 = arith.extui %91 : vector<1x32xi1> to vector<1x32xi32>
    %177 = arith.sitofp %176 : vector<1x32xi32> to vector<1x32xf32>
    %178 = vector.broadcast %177 : vector<1x32xf32> to vector<2x32xf32>
    %179 = vector.broadcast %175 : vector<2x1xf32> to vector<2x32xf32>
    %180 = arith.mulf %178, %179 : vector<2x32xf32>
    %181 = arith.addf %169, %180 : vector<2x32xf32>
    %cst_50 = arith.constant 0.000000e+00 : f32
    %182 = vector.shape_cast %93 : vector<1x32xi1> to vector<1x32xi1>
    %183 = vector.broadcast %182 : vector<1x32xi1> to vector<2x32xi1>
    %184 = vector.broadcast %cst_50 : f32 to vector<2x32xf32>
    %185 = arith.select %183, %144, %184 : vector<2x32xi1>, vector<2x32xf32>
    %cst_51 = arith.constant dense<0.000000e+00> : vector<2xf32>
    %186 = vector.multi_reduction <add>, %185, %cst_51 [1] : vector<2x32xf32> to vector<2xf32>
    %187 = vector.shape_cast %186 : vector<2xf32> to vector<2x1xf32>
    %188 = arith.extui %93 : vector<1x32xi1> to vector<1x32xi32>
    %189 = arith.sitofp %188 : vector<1x32xi32> to vector<1x32xf32>
    %190 = vector.broadcast %189 : vector<1x32xf32> to vector<2x32xf32>
    %191 = vector.broadcast %187 : vector<2x1xf32> to vector<2x32xf32>
    %192 = arith.mulf %190, %191 : vector<2x32xf32>
    %193 = arith.addf %181, %192 : vector<2x32xf32>
    %194 = arith.divf %144, %193 : vector<2x32xf32>
    %195 = arith.truncf %194 : vector<2x32xf32> to vector<2x32xbf16>
    %cst_52 = arith.constant dense<0.000000e+00> : vector<2x128xf32>
    %196 = tpu.matmul %195, %6, %cst_52 {dimension_numbers = #tpu.dot_dimension_numbers<[1], [0], [0], [1], [0, 0, 1, 1], [], []>} : vector<2x32xbf16>, vector<32x128xbf16>, vector<2x128xf32> -> vector<2x128xf32>
    %197 = vector.extract_strided_slice %196 {offsets = [0, 32], sizes = [2, 32], strides = [1, 1]} : vector<2x128xf32> to vector<2x32xf32>
    %198 = arith.addf %44, %197 : vector<2x32xf32>
    %199 = math.tanh %198 : vector<2x32xf32>
    %200 = arith.truncf %199 : vector<2x32xf32> to vector<2x32xbf16>
    %cst_53 = arith.constant dense<0.000000e+00> : vector<2x128xf32>
    %201 = tpu.matmul %200, %4, %cst_53 {dimension_numbers = #tpu.dot_dimension_numbers<[1], [0], [0], [1], [0, 0, 1, 1], [], []>} : vector<2x32xbf16>, vector<32x128xbf16>, vector<2x128xf32> -> vector<2x128xf32>
    %202 = arith.addf %39, %201 : vector<2x128xf32>
    %203 = vector.broadcast %13 : vector<1x128xf32> to vector<2x128xf32>
    %204 = arith.addf %202, %203 : vector<2x128xf32>
    %205 = vector.extract_strided_slice %204 {offsets = [0, 0], sizes = [2, 32], strides = [1, 1]} : vector<2x128xf32> to vector<2x32xf32>
    %206 = arith.negf %205 : vector<2x32xf32>
    %207 = math.exp %206 : vector<2x32xf32>
    %cst_54 = arith.constant 1.000000e+00 : f32
    %208 = vector.broadcast %cst_54 : f32 to vector<2x32xf32>
    %209 = arith.addf %208, %207 : vector<2x32xf32>
    %210 = arith.divf %208, %209 : vector<2x32xf32>
    %211 = vector.extract_strided_slice %204 {offsets = [0, 32], sizes = [2, 32], strides = [1, 1]} : vector<2x128xf32> to vector<2x32xf32>
    %212 = arith.negf %211 : vector<2x32xf32>
    %213 = math.exp %212 : vector<2x32xf32>
    %cst_55 = arith.constant 1.000000e+00 : f32
    %214 = vector.broadcast %cst_55 : f32 to vector<2x32xf32>
    %215 = arith.addf %214, %213 : vector<2x32xf32>
    %216 = arith.divf %214, %215 : vector<2x32xf32>
    %217 = vector.extract_strided_slice %204 {offsets = [0, 64], sizes = [2, 32], strides = [1, 1]} : vector<2x128xf32> to vector<2x32xf32>
    %218 = math.tanh %217 : vector<2x32xf32>
    %219 = vector.extract_strided_slice %204 {offsets = [0, 96], sizes = [2, 32], strides = [1, 1]} : vector<2x128xf32> to vector<2x32xf32>
    %220 = arith.negf %219 : vector<2x32xf32>
    %221 = math.exp %220 : vector<2x32xf32>
    %cst_56 = arith.constant 1.000000e+00 : f32
    %222 = vector.broadcast %cst_56 : f32 to vector<2x32xf32>
    %223 = arith.addf %222, %221 : vector<2x32xf32>
    %224 = arith.divf %222, %223 : vector<2x32xf32>
    %225 = arith.mulf %216, %26 : vector<2x32xf32>
    %226 = arith.mulf %210, %218 : vector<2x32xf32>
    %227 = arith.addf %225, %226 : vector<2x32xf32>
    %228 = math.tanh %227 : vector<2x32xf32>
    %229 = arith.mulf %224, %228 : vector<2x32xf32>
    %230 = arith.truncf %229 : vector<2x32xf32> to vector<2x32xbf16>
    %cst_57 = arith.constant dense<0.000000e+00> : vector<2x128xf32>
    %231 = tpu.matmul %230, %6, %cst_57 {dimension_numbers = #tpu.dot_dimension_numbers<[1], [0], [0], [1], [0, 0, 1, 1], [], []>} : vector<2x32xbf16>, vector<32x128xbf16>, vector<2x128xf32> -> vector<2x128xf32>
    %232 = vector.extract_strided_slice %231 {offsets = [0, 64], sizes = [2, 32], strides = [1, 1]} : vector<2x128xf32> to vector<2x32xf32>
    %233 = vector.broadcast %11 : vector<1x32xf32> to vector<2x32xf32>
    %234 = arith.addf %232, %233 : vector<2x32xf32>
    %cst_58 = arith.constant 0xFF800000 : f32
    %235 = vector.shape_cast %16 : vector<1x32xi1> to vector<1x32xi1>
    %236 = vector.broadcast %235 : vector<1x32xi1> to vector<2x32xi1>
    %237 = vector.broadcast %cst_58 : f32 to vector<2x32xf32>
    %238 = arith.select %236, %234, %237 : vector<2x32xi1>, vector<2x32xf32>
    %cst_59 = arith.constant dense<0xFF800000> : vector<2xf32>
    %239 = vector.multi_reduction <maximumf>, %238, %cst_59 [1] : vector<2x32xf32> to vector<2xf32>
    %240 = vector.shape_cast %239 : vector<2xf32> to vector<2x1xf32>
    %241 = vector.broadcast %240 : vector<2x1xf32> to vector<2x32xf32>
    %242 = arith.subf %234, %241 : vector<2x32xf32>
    %243 = math.exp %242 : vector<2x32xf32>
    %cst_60 = arith.constant 0.000000e+00 : f32
    %244 = vector.shape_cast %16 : vector<1x32xi1> to vector<1x32xi1>
    %245 = vector.broadcast %244 : vector<1x32xi1> to vector<2x32xi1>
    %246 = vector.broadcast %cst_60 : f32 to vector<2x32xf32>
    %247 = arith.select %245, %243, %246 : vector<2x32xi1>, vector<2x32xf32>
    %cst_61 = arith.constant dense<0.000000e+00> : vector<2xf32>
    %248 = vector.multi_reduction <add>, %247, %cst_61 [1] : vector<2x32xf32> to vector<2xf32>
    %249 = vector.shape_cast %248 : vector<2xf32> to vector<2x1xf32>
    %250 = math.log %249 : vector<2x1xf32>
    %251 = arith.addf %240, %250 : vector<2x1xf32>
    %252 = vector.broadcast %251 : vector<2x1xf32> to vector<2x32xf32>
    %253 = arith.subf %234, %252 : vector<2x32xf32>
    %cst_62 = arith.constant 0.000000e+00 : f32
    %254 = vector.shape_cast %19 : vector<1x32xi1> to vector<1x32xi1>
    %255 = vector.broadcast %254 : vector<1x32xi1> to vector<2x32xi1>
    %256 = vector.broadcast %cst_62 : f32 to vector<2x32xf32>
    %257 = arith.select %255, %234, %256 : vector<2x32xi1>, vector<2x32xf32>
    %258 = vector.shape_cast %16 : vector<1x32xi1> to vector<1x32xi1>
    %259 = vector.broadcast %258 : vector<1x32xi1> to vector<2x32xi1>
    %260 = arith.select %259, %253, %257 : vector<2x32xi1>, vector<2x32xf32>
    %cst_63 = arith.constant 0.000000e+00 : f32
    %261 = vector.broadcast %cst_63 : f32 to vector<2x64xf32>
    %262 = tpu.concatenate %194, %80, %78, %260, %229, %227, %261 in 1 : vector<2x32xf32>, vector<2x32xf32>, vector<2x32xf32>, vector<2x32xf32>, vector<2x32xf32>, vector<2x32xf32>, vector<2x64xf32> -> vector<2x256xf32>
    %c0_64 = arith.constant 0 : index
    %c0_65 = arith.constant 0 : index
    %263 = vector.load %arg7[%c0_64, %c0_65] : memref<2x256xf32, #tpu.memory_space<vmem>>, vector<2x256xf32>
    tpu.vector_store %arg7[%c0_64, %c0_65], %262 {strides = array<i32>} : memref<2x256xf32, #tpu.memory_space<vmem>>, vector<2x256xf32>,
    return
  }
}

</mosaic_0001>

<bundles_post_ra>
// kernel: _forward_talk.1
= control target key start
LH: loop header
LB: loop body
LE: loop exit
PB: predicated region body
PF: predicated region fallthrough
CT: control target
= control target key end

     0   :  { %v1162_v0 = vmov 0   ;;  %v1163_v2 = vmov 0.0   ;;  %vm1164_vm0 = vmmov 0   ;;  %vm80_vm1 = vcmask 130048   ;;  %s1167_s14 = smov 32   ;;  %s1519_s5 = inlined_call_operand.vmem [shape: bf16[336,128], index: 5, kind: input, shape index: {}]   ;;  %s1520_s2 = inlined_call_operand.vmem [shape: f32[2,16], index: 2, kind: input, shape index: {}]   ;;  %s1521_s0 = inlined_call_operand.vmem [shape: f32[2,147], index: 0, kind: input, shape index: {}]   ;;  %s1522_s1 = inlined_call_operand.vmem [shape: f32[2,147], index: 1, kind: input, shape index: {}]   ;;  %s1523_s3 = inlined_call_operand.vmem [shape: f32[2,64], index: 3, kind: input, shape index: {}]   ;;  %s1524_s6 = inlined_call_operand.vmem [shape: f32[8,128], index: 6, kind: input, shape index: {}]   ;;  %s1525_s4 = inlined_call_operand.vmem [shape: f32[2,64], index: 4, kind: input, shape index: {}]   ;;  %s1526_s7 = inlined_call_operand.vmem [shape: f32[2,256], index: 7, kind: output, shape index: {}]  }
   0x1   :  { %206 = vmatprep.subr.bf16.mxu1 %v1162_v0  ;;  %v1113_v1 = vld [vmem:[%s1519_s5] sm:$0xff]   ;;  %1038 = vmatprep.subr.bf16.mxu0 %v1163_v2  ;;  %v1114_v3 = vld [vmem:[%s1519_s5 + $0x8] sm:$0xff]   ;;  %v1115_v4 = vld [vmem:[%s1519_s5 + $0x10] sm:$0xff]   ;;  %vm195_vm2 = vcmask 154624   ;;  %vm199_vm3 = vcmask 1040384   ;;  %vm200_vm4 = vcmask 1041408   ;;  %v306_v37 = vlaneseq }
   0x2   :  { %1040 = vmatprep.mubr.msk.bf16.mxu0 %vm1164_vm0, %v1163_v2  ;;  %207 = vmatpush1.bf16.msra.mxu1 %v1113_v1  ;;  %v1122_v5 = vld [vmem:[%s1519_s5 + $0x50] sm:$0xff]   ;;  %v1116_v6 = vld [vmem:[%s1519_s5 + $0x18] sm:$0xff]   ;;  %v72_v7 = vld [vmem:[%s1520_s2] sm:$0x3]  ;;  %v1165_v16 = vmov 65535   ;;  %vm327_vm5 = vcmask 261120  }
   0x3   :  { %208 = vmatprep.subr.bf16.mxu1 %v1162_v0  ;;  %1039 = vmatpush3.bf16.msra.mxu0 %v1122_v5  ;;  %v73_v8 = vpack.c.bf16 %v72_v7, %v72_v7  ;;  %v1117_v9 = vld [vmem:[%s1519_s5 + $0x20] sm:$0xff]   ;;  %v1118_v13 = vld [vmem:[%s1519_s5 + $0x28] sm:$0xff]   ;;  %v1119_v14 = vld [vmem:[%s1519_s5 + $0x30] sm:$0xff]   ;;  %v201_v17 = vsel %vm199_vm3, 4294967295, %v1165_v16  ;;  %v1306_v38 = vshrl.u32 %v306_v37, 7  ;;  %vm534_vm12 = vcmask 779776  }
   0x4   :  { %v977_v10 = vld.sshfl [vmem:[%s1521_s0] sm:$0x33 pattern:$0x76325410]  ;;  %263 = vmatprep.subr.bf16.mxu0 %v1162_v0  ;;  %v1120_v15 = vld [vmem:[%s1519_s5 + $0x38] sm:$0xff]   ;;  %v202_v20 = vsel %vm200_vm4, %v201_v17, 0 }
   0x5   :  { %v133_v11 = vcombine.high %v977_v10, %v977_v10  ;;  %v1121_v18 = vld [vmem:[%s1519_s5 + $0x40] sm:$0xff]   ;;  %v1123_v19 = vld [vmem:[%s1519_s5 + $0x48] ss:$0 sps:$4 sm:$0x33]   ;;  %v136_v22 = vpack.c.bf16 %v977_v10, %v977_v10  ;;  %v1125_v28 = vld [vmem:[%s1519_s5 + $0x58] sm:$0xff]   ;;  %v308_v39 = vsub.s32 0, %v1306_v38 }
   0x6   :  { %209 = vmatpush1.bf16.msra.mxu1 %v1114_v3  ;;  %1041 = vmatmul.mubr.msk.bf16.vlgmr.msra.gmra.mrb[0].mxu0 %vm80_vm1, %v73_v8  ;;  %v204_v21 = vand.u32 %v1123_v19, %v202_v20  ;;  %v989_v23 = vld.sshfl [vmem:[%s1522_s1] sm:$0x33 pattern:$0x76325410]  ;;  %v1124_v27 = vld [vmem:[%s1519_s5 + $0x68] sm:$0xff]   ;;  %v1126_v29 = vld [vmem:[%s1519_s5 + $0x70] sm:$0xff]  }
   0x7   :  { %210 = vmatprep.subr.bf16.mxu1 %v1162_v0  ;;  %v137_v12 = vpack.c.bf16 %v133_v11, %v133_v11  ;;  %264 = vmatpush1.bf16.msra.mxu0 %v1113_v1  ;;  %v255_v24 = vcombine.high %v989_v23, %v989_v23  ;;  %v258_v26 = vpack.c.bf16 %v989_v23, %v989_v23  ;;  %v70_v30 = vld [vmem:[%s1523_s3] sm:$0x3]  ;;  %v428_v54 = vsub.s32 1, %v1306_v38  ;;  %v1334_v10 = vld [vmem:[%s1519_s5 + $0x98] sm:$0xff]  }
   0x8   :  { %265 = vmatprep.subr.bf16.mxu0 %v1162_v0  ;;  %v1127_v31 = vld [vmem:[%s1519_s5 + $0x60] sm:$0xff]   ;;  %v303_v32 = vpack.c.bf16 %v70_v30, %v70_v30  ;;  %v1362_v23 = vsub.s32 3, %v1306_v38  ;;  %vm612_vm15 = vcmask 254976   ;;  %vm955_vm3 = vcmask 785408  }
   0x9   :  { %988 = vmatprep.mubr.msk.bf16.mxu1 %vm195_vm2, %v137_v12  ;;  %v259_v25 = vpack.c.bf16 %v255_v24, %v255_v24  ;;  %v1312_v40 = vld [vmem:[%s1524_s6] sm:$0xff]  ;;  %s1166_s6 = smov 64  }
   0xa   :  { %211 = vmatpush1.bf16.msra.mxu1 %v1115_v4  ;;  %v1315_v42 = vrot.slane %v1312_v40, %v308_v39  ;;  %v429_v55 = vrot.slane %v1312_v40, %v428_v54  ;;  %v1340_v11 = vld [vmem:[%s1519_s5 + $0xa0] sm:$0xff]   ;;  %vm520_vm6 = vcmp.eq.f32.partialorder %v1312_v40, 1.0  ;;  %vm519_vm7 = vcmp.eq.f32.partialorder %v1312_v40, 0.0 }
   0xb   :  { %212 = vmatprep.subr.bf16.mxu1 %v1162_v0  ;;  %266 = vmatpush1.bf16.msra.mxu0 %v1114_v3  ;;  %vm521_vm8 = vcmp.eq.f32.partialorder %v1312_v40, 2.0  ;;  %v545_v24 = vsel %vm520_vm6, 1, %v1162_v0  ;;  %vm522_vm9 = vcmp.eq.f32.partialorder %v1312_v40, 3.0 }
   0xc   :  { %267 = vmatprep.subr.bf16.mxu0 %v1162_v0  ;;  %990 = vmatprep.mubr.msk.bf16.mxu0 %vm195_vm2, %v259_v25  ;;  %v523_v25 = vsel %vm519_vm7, 1, %v1162_v0  ;;  %vm953_vm2 = vcmask 523264  }
   0xe   :  { %213 = vmatpush1.bf16.msra.mxu1 %v1116_v6 }
   0xf   :  { %214 = vmatprep.subr.bf16.mxu1 %v1162_v0  ;;  %268 = vmatpush1.bf16.msra.mxu0 %v1115_v4 }
  0x10   :  { %269 = vmatprep.subr.bf16.mxu0 %v1162_v0 }
  0x12   :  { %215 = vmatpush1.bf16.msra.mxu1 %v1117_v9 }
  0x13   :  { %216 = vmatprep.subr.bf16.mxu1 %v1162_v0  ;;  %270 = vmatpush1.bf16.msra.mxu0 %v1116_v6 }
  0x14   :  { %271 = vmatprep.subr.bf16.mxu0 %v1162_v0 }
  0x16   :  { %217 = vmatpush1.bf16.msra.mxu1 %v1118_v13 }
  0x17   :  { %218 = vmatprep.subr.bf16.mxu1 %v1162_v0  ;;  %272 = vmatpush1.bf16.msra.mxu0 %v1117_v9 }
  0x18   :  { %273 = vmatprep.subr.bf16.mxu0 %v1162_v0 }
  0x1a   :  { %219 = vmatpush1.bf16.msra.mxu1 %v1119_v14 }
  0x1b   :  { %220 = vmatprep.subr.bf16.mxu1 %v1162_v0  ;;  %274 = vmatpush1.bf16.msra.mxu0 %v1118_v13 }
  0x1c   :  { %275 = vmatprep.subr.bf16.mxu0 %v1162_v0 }
  0x1e   :  { %221 = vmatpush1.bf16.msra.mxu1 %v1120_v15 }
  0x1f   :  { %222 = vmatprep.subr.bf16.mxu1 %v1162_v0  ;;  %276 = vmatpush1.bf16.msra.mxu0 %v1119_v14 }
  0x20   :  { %277 = vmatprep.subr.bf16.mxu0 %v1162_v0 }
  0x22   :  { %223 = vmatpush1.bf16.msra.mxu1 %v1121_v18 }
  0x23   :  { %224 = vmatprep.subr.bf16.mxu1 %v1162_v0  ;;  %278 = vmatpush1.bf16.msra.mxu0 %v1120_v15 }
  0x24   :  { %279 = vmatprep.subr.bf16.mxu0 %v1162_v0 }
  0x26   :  { %225 = vmatpush1.bf16.msra.mxu1 %v204_v21 }
  0x27   :  { %1044 = vmatprep.subr.bf16.mxu1 %v1163_v2  ;;  %280 = vmatpush1.bf16.msra.mxu0 %v1121_v18 }
  0x28   :  { %281 = vmatprep.subr.bf16.mxu0 %v1162_v0 }
  0x29   :  { %239 = vmatmul.mubr.bf16.vlgmr.msra.gmra.mrb[0].mxu1 %v136_v22 }
  0x2a   :  { %1048 = vmatprep.mubr.msk.bf16.mxu1 %vm1164_vm0, %v1163_v2  ;;  %1045 = vmatpush3.bf16.msra.mxu1 %v1125_v28  ;;  %v527_v28 = vrot.slane %v523_v25, %v1362_v23 }
  0x2b   :  { %282 = vmatpush1.bf16.msra.mxu0 %v204_v21  ;;  %1046 = vmatprep.subr.bf16.mxu1 %v1163_v2 }
  0x2c   :  { %1052 = vmatprep.subr.bf16.mxu0 %v1163_v2  ;;  %vm1385_vm11 = vcmp.eq.s32.totalorder %v527_v28, 1 }
  0x2e   :  { %296 = vmatmul.mubr.bf16.vlgmr.msra.gmra.mrb[4].mxu0 %v258_v26  ;;  %1047 = vmatpush3.bf16.msra.mxu1 %v1127_v31  ;;  %v562_v26 = vsel %vm521_vm8, 1, %v1162_v0 }
  0x2f   :  { %1053 = vmatpush3.bf16.msra.mxu0 %v1124_v27  ;;  %1056 = vmatprep.mubr.msk.bf16.mxu0 %vm1164_vm0, %v1163_v2  ;;  %v549_v27 = vrot.slane %v545_v24, %v1362_v23 }
  0x30   :  { %1054 = vmatprep.subr.bf16.mxu0 %v1163_v2  ;;  %1060 = vmatprep.subr.bf16.mxu1 %v1163_v2 }
  0x31   :  { %vm1381_vm10 = vcmp.eq.s32.totalorder %v549_v27, 1 }
  0x33   :  { %1055 = vmatpush3.bf16.msra.mxu0 %v1126_v29  ;;  %v566_v29 = vrot.slane %v562_v26, %v1362_v23 }
  0x34   :  { %1068 = vmatprep.subr.bf16.mxu0 %v1163_v2 }
  0x35   :  { %vm1389_vm13 = vcmp.eq.s32.totalorder %v566_v29, 1 }
  0x36   :  { %1057 = vmatmul.mubr.msk.bf16.vlgmr.msra.gmra.mrb[8].mxu0 %vm327_vm5, %v303_v32 }
  0x37   :  { %1072 = vmatprep.mubr.msk.bf16.mxu0 %vm1164_vm0, %v1163_v2  ;;  %1069 = vmatpush3.bf16.msra.mxu0 %v1334_v10 }
  0x38   :  { %1070 = vmatprep.subr.bf16.mxu0 %v1163_v2 }
  0x3b   :  { %1071 = vmatpush3.bf16.msra.mxu0 %v1340_v11 }
  0x3c   :  { %1084 = vmatprep.subr.bf16.mxu0 %v1163_v2 }
  0xd9   :  { %v1304_v33 = vpop.f32.mrb[0].mxu0 }
  0xda   :  { %v1042_v34 = vpop.f32.mrb[1].mxu0 }
  0xdb   :  { %v121_v35 = vpop.f32.mrb[2].mxu0 }
  0xdc   :  { %v1043_v36 = vpop.f32.mrb[3].mxu0 }
  0xfc   :  { %v240_v41 = vpop.f32.mrb[0].mxu1 }
  0xfd   :  { %v311_v43 = vadd.f32 %v240_v41, %v1304_v33  ;;  %v242_v44 = vpop.f32.mrb[1].mxu1 }
  0xfe   :  { %v243_v45 = vpop.f32.mrb[2].mxu1 }
  0xff   :  { %v312_v46 = vadd.f32 %v311_v43, %v1315_v42  ;;  %v244_v47 = vpop.f32.mrb[3].mxu1 }
 0x101   :  { %1134 = vtanh.f32 %v312_v46 }
 0x109   :  { %v420_v50 = vpop.f32.mrb[8].mxu0 }
 0x10a   :  { %v1058_v51 = vpop.f32.mrb[9].mxu0 }
 0x10b   :  { %v1135_v48 = vpop.eup %1134  ;;  %v423_v52 = vpop.f32.mrb[10].mxu0  ;;  %v1003_v51 = vsel %vm521_vm8, 1.0, %v1163_v2 }
 0x10c   :  { %v314_v49 = vpack.c.bf16 %v1135_v48, %v1135_v48  ;;  %v1059_v53 = vpop.f32.mrb[11].mxu0 }
 0x10e   :  { %1049 = vmatmul.mubr.msk.bf16.vlgmr.msra.gmra.mrb[4].mxu1 %vm327_vm5, %v314_v49  ;;  %v1002_v49 = vsel %vm520_vm6, 1.0, %v1163_v2 }
 0x10f   :  { %1064 = vmatprep.mubr.msk.bf16.mxu1 %vm1164_vm0, %v1163_v2  ;;  %1061 = vmatpush3.bf16.msra.mxu1 %v1334_v10  ;;  %v559_v52 = vrot.slane %v1002_v49, %v1362_v23  ;;  %v1132_v49 = vld [vmem:[%s1519_s5 + $0x90] sm:$0xff]  }
 0x110   :  { %1062 = vmatprep.subr.bf16.mxu1 %v1163_v2 }
 0x113   :  { %1063 = vmatpush3.bf16.msra.mxu1 %v1340_v11 }
 0x114   :  { %1076 = vmatprep.subr.bf16.mxu1 %v1163_v2 }
 0x1e1   :  { %v365_v56 = vpop.f32.mrb[4].mxu1 }
 0x1e2   :  { %v421_v57 = vadd.f32 %v420_v50, %v365_v56  ;;  %v1050_v58 = vpop.f32.mrb[5].mxu1  ;;  %v1001_v50 = vsel %vm519_vm7, 1.0, %v1163_v2  ;;  %v576_v56 = vrot.slane %v1003_v51, %v1362_v23  ;;  %v71_v51 = vld [vmem:[%s1525_s4] sm:$0x3]  ;;  %s1168_s4 = smov 96  }
 0x1e3   :  { %v368_v59 = vpop.f32.mrb[6].mxu1  ;;  %v542_v53 = vrot.slane %v1001_v50, %v1362_v23  ;;  %v1133_v50 = vld [vmem:[%s1519_s5 + $0x80] sm:$0xff]  }
 0x1e4   :  { %v430_v60 = vadd.f32 %v429_v55, %v421_v57  ;;  %v1051_v61 = vpop.f32.mrb[7].mxu1  ;;  %v1004_v57 = vsel %vm522_vm9, 1.0, %v1163_v2 }
 0x1e6   :  { %1136 = vtanh.f32 %v430_v60  ;;  %v997_v63 = vmul.f32 -1.442695, %v430_v60 }
 0x1e8   :  { %1138 = vpow2.f32 %v997_v63 }
 0x1f0   :  { %v1137_v62 = vpop.eup %1136 }
 0x1f1   :  { %440 = vrot.lane.b32.xlu0 %v1137_v62, %s1166_s6  ;;  %v593_v62 = vrot.slane %v1004_v57, %v1362_v23 }
 0x1f2   :  { %v1139_v1 = vpop.eup %1138 }
 0x1f3   :  { %v434_v3 = vadd.f32 1.0, %v1139_v1 }
 0x1f5   :  { %1140 = vrcp.f32 %v434_v3 }
 0x1ff   :  { %v1141_v4 = vpop.eup %1140 }
 0x200   :  { %v438_v7 = vmul.f32 %v1141_v4, %v70_v30  ;;  %v579_v30 = vsel %vm522_vm9, 1, %v1162_v0 }
 0x201   :  { %v583_v36 = vrot.slane %v579_v30, %v1362_v23 }
 0x203   :  { %vm1400_vm14 = vcmp.eq.s32.totalorder %v583_v36, 1 }
 0x263   :  { %v441_v5 = vpop.permute.xlu0 %440 }
 0x264   :  { %v443_v6 = vmul.f32 %v1141_v4, %v441_v5 }
 0x266   :  { %445 = vrot.lane.b32.xlu0 %v443_v6, %s1167_s14 }
 0x26a   :  { %515 = vrot.lane.b32.xlu0 %v1315_v42, %s1166_s6 }
 0x2d8   :  { %v446_v8 = vpop.permute.xlu0 %445 }
 0x2d9   :  { %v1328_v9 = vadd.f32 %v446_v8, %v438_v7 }
 0x2db   :  { %1142 = vtanh.f32 %v1328_v9 }
 0x2dc   :  { %v516_v17 = vpop.permute.xlu0 %515 }
 0x2e5   :  { %v1143_v12 = vpop.eup %1142 }
 0x2e6   :  { %451 = vrot.lane.b32.xlu1 %v1143_v12, %s1166_s6 }
 0x358   :  { %v452_v13 = vpop.permute.xlu1 %451 }
 0x359   :  { %v1350_v14 = vmul.f32 %v1141_v4, %v452_v13 }
 0x35b   :  { %v455_v15 = vpack.c.bf16 %v1350_v14, %v1350_v14 }
 0x35d   :  { %457 = vrot.lane.b32.xlu1 %v455_v15, %s1167_s14 }
 0x3cf   :  { %v458_v16 = vpop.permute.xlu1 %457 }
 0x3d0   :  { %1065 = vmatmul.mubr.msk.bf16.vlgmr.msra.gmra.mrb[8].mxu1 %vm327_vm5, %v458_v16 }
 0x3d1   :  { %1080 = vmatprep.mubr.msk.bf16.mxu1 %vm1164_vm0, %v1163_v2 }
 0x4a3   :  { %v508_v18 = vpop.f32.mrb[8].mxu1 }
 0x4a4   :  { %v518_v19 = vadd.f32 %v516_v17, %v508_v18  ;;  %v1066_v20 = vpop.f32.mrb[9].mxu1 }
 0x4a5   :  { %v511_v21 = vpop.f32.mrb[10].mxu1 }
 0x4a6   :  { %530 = vrot.lane.b32.xlu1 %v518_v19, %s1166_s6  ;;  %v1067_v22 = vpop.f32.mrb[11].mxu1 }
 0x518   :  { %v531_v34 = vpop.permute.xlu1 %530 }
 0x519   :  { %v551_v37 = vsel %vm1381_vm10, %v531_v34, -1e+30  ;;  %v533_v39 = vsel %vm1385_vm11, %v531_v34, -1e+30  ;;  %v568_v44 = vsel %vm1389_vm13, %v531_v34, -1e+30 }
 0x51a   :  { %v552_v41 = vsel %vm534_vm12, %v551_v37, -inf  ;;  %v535_v43 = vsel %vm534_vm12, %v533_v39, -inf  ;;  %v569_v46 = vsel %vm534_vm12, %v568_v44, -inf  ;;  %v585_v47 = vsel %vm1400_vm14, %v531_v34, -1e+30 }
 0x51b   :  { %553 = vmax.xlane.f32.xlu1 %v552_v41  ;;  %536 = vmax.xlane.f32.xlu0 %v535_v43  ;;  %v586_v48 = vsel %vm534_vm12, %v585_v47, -inf  ;;  %v1130_v47 = vld [vmem:[%s1519_s5 + $0x88] sm:$0xff]  }
 0x51f   :  { %570 = vmax.xlane.f32.xlu0 %v569_v46 }
 0x523   :  { %587 = vmax.xlane.f32.xlu0 %v586_v48  ;;  %v1131_v48 = vld [vmem:[%s1519_s5 + $0x78] sm:$0xff]  }
 0x524   :  { %1077 = vmatpush3.bf16.msra.mxu1 %v1131_v48 }
 0x525   :  { %1078 = vmatprep.subr.bf16.mxu1 %v1163_v2 }
 0x528   :  { %1079 = vmatpush3.bf16.msra.mxu1 %v1133_v50 }
 0x529   :  { %1092 = vmatprep.subr.bf16.mxu1 %v1163_v2 }
 0x5a8   :  { %v554_v54 = vpop.xlane.xlu1 %553  ;;  %v537_v55 = vpop.xlane.xlu0 %536 }
 0x5a9   :  { %v560_v58 = vmul.f32 %v559_v52, %v554_v54  ;;  %v543_v59 = vmul.f32 %v542_v53, %v537_v55 }
 0x5ab   :  { %v561_v63 = vadd.f32 %v560_v58, %v543_v59 }
 0x5ac   :  { %v571_v60 = vpop.xlane.xlu0 %570 }
 0x5ad   :  { %v577_v61 = vmul.f32 %v576_v56, %v571_v60 }
 0x5af   :  { %v578_v3 = vadd.f32 %v577_v61, %v561_v63 }
 0x5b0   :  { %v588_v1 = vpop.xlane.xlu0 %587 }
 0x5b1   :  { %v594_v4 = vmul.f32 %v593_v62, %v588_v1 }
 0x5b3   :  { %v595_v5 = vadd.f32 %v594_v4, %v578_v3 }
 0x5b5   :  { %597 = vrot.lane.b32.xlu1 %v595_v5, %s1166_s6 }
 0x627   :  { %v598_v6 = vpop.permute.xlu1 %597 }
 0x628   :  { %v600_v7 = vsub.f32 %v518_v19, %v598_v6 }
 0x62a   :  { %v601_v8 = vmul.f32 1.442695, %v600_v7 }
 0x62c   :  { %1144 = vpow2.f32 %v601_v8 }
 0x636   :  { %v1145_v12 = vpop.eup %1144 }
 0x637   :  { %604 = vrot.lane.b32.xlu0 %v1145_v12, %s1166_s6 }
 0x6a9   :  { %v605_v13 = vpop.permute.xlu0 %604 }
 0x6aa   :  { %v628_v15 = vsel %vm1389_vm13, %v605_v13, 0.0  ;;  %v607_v16 = vsel %vm1385_vm11, %v605_v13, 0.0  ;;  %v618_v17 = vsel %vm1381_vm10, %v605_v13, 0.0  ;;  %v638_v18 = vsel %vm1400_vm14, %v605_v13, 0.0 }
 0x6ab   :  { %630 = vrot.lane.b32.xlu0 %v628_v15, %s1166_s6  ;;  %609 = vrot.lane.b32.xlu1 %v607_v16, %s1166_s6 }
 0x6af   :  { %620 = vrot.lane.b32.xlu1 %v618_v17, %s1166_s6 }
 0x6b3   :  { %640 = vrot.lane.b32.xlu1 %v638_v18, %s1166_s6 }
 0x71d   :  { %v610_v19 = vpop.permute.xlu1 %609  ;;  %v631_v21 = vpop.permute.xlu0 %630 }
 0x71e   :  { %v613_v20 = vsel %vm612_vm15, %v610_v19, 0.0  ;;  %v633_v24 = vsel %vm612_vm15, %v631_v21, 0.0 }
 0x71f   :  { %614 = vadd.xlane.f32.xlu0 %v613_v20 }
 0x721   :  { %v621_v22 = vpop.permute.xlu1 %620 }
 0x722   :  { %v623_v25 = vsel %vm612_vm15, %v621_v22, 0.0 }
 0x723   :  { %634 = vadd.xlane.f32.xlu0 %v633_v24  ;;  %624 = vadd.xlane.f32.xlu1 %v623_v25 }
 0x725   :  { %v641_v26 = vpop.permute.xlu1 %640 }
 0x726   :  { %v643_v27 = vsel %vm612_vm15, %v641_v26, 0.0 }
 0x727   :  { %644 = vadd.xlane.f32.xlu0 %v643_v27 }
 0x7ac   :  { %v615_v28 = vpop.xlane.xlu0 %614 }
 0x7ad   :  { %v616_v31 = vmul.f32 %v615_v28, %v542_v53  ;;  %v1100_v53 = vadd.f32 %v1315_v42, %v1304_v33  ;;  %v816_v33 = vsub.s32 2, %v1306_v38 }
 0x7af   :  { %v817_v4 = vrot.slane %v1312_v40, %v816_v33 }
 0x7b0   :  { %v635_v29 = vpop.xlane.xlu0 %634  ;;  %v625_v30 = vpop.xlane.xlu1 %624 }
 0x7b1   :  { %v626_v32 = vmul.f32 %v625_v30, %v559_v52  ;;  %v636_v34 = vmul.f32 %v635_v29, %v576_v56  ;;  %v304_v52 = vpack.c.bf16 %v71_v51, %v71_v51 }
 0x7b3   :  { %v627_v35 = vadd.f32 %v626_v32, %v616_v31 }
 0x7b4   :  { %v645_v36 = vpop.xlane.xlu0 %644 }
 0x7b5   :  { %v637_v37 = vadd.f32 %v636_v34, %v627_v35  ;;  %v646_v39 = vmul.f32 %v645_v36, %v593_v62 }
 0x7b7   :  { %v647_v41 = vadd.f32 %v646_v39, %v637_v37 }
 0x7b9   :  { %649 = vrot.lane.b32.xlu1 %v647_v41, %s1166_s6 }
 0x82b   :  { %v650_v43 = vpop.permute.xlu1 %649 }
 0x82c   :  { %1146 = vrcp.f32 %v650_v43 }
 0x836   :  { %v1147_v44 = vpop.eup %1146 }
 0x837   :  { %v1441_v45 = vmul.f32 %v1147_v44, %v1145_v12 }
 0x839   :  { %v654_v46 = vpack.c.bf16 %v1441_v45, %v1441_v45 }
 0x83b   :  { %1073 = vmatmul.mubr.msk.bf16.vlgmr.msra.gmra.mrb[4].mxu0 %vm327_vm5, %v654_v46 }
 0x83c   :  { %1088 = vmatprep.mubr.msk.bf16.mxu0 %vm1164_vm0, %v1163_v2  ;;  %1085 = vmatpush3.bf16.msra.mxu0 %v1130_v47 }
 0x83d   :  { %1086 = vmatprep.subr.bf16.mxu0 %v1163_v2 }
 0x840   :  { %1087 = vmatpush3.bf16.msra.mxu0 %v1132_v49 }
 0x843   :  { %1089 = vmatmul.mubr.msk.bf16.vlgmr.msra.gmra.mrb[12].mxu0 %vm327_vm5, %v304_v52 }
 0x90e   :  { %v692_v54 = vpop.f32.mrb[4].mxu0 }
 0x90f   :  { %v1101_v55 = vadd.f32 %v1100_v53, %v692_v54  ;;  %v1074_v56 = vpop.f32.mrb[5].mxu0 }
 0x910   :  { %v695_v57 = vpop.f32.mrb[6].mxu0 }
 0x911   :  { %1148 = vtanh.f32 %v1101_v55  ;;  %v1075_v58 = vpop.f32.mrb[7].mxu0 }
 0x916   :  { %v808_v61 = vpop.f32.mrb[12].mxu0 }
 0x917   :  { %v1090_v62 = vpop.f32.mrb[13].mxu0 }
 0x918   :  { %v811_v63 = vpop.f32.mrb[14].mxu0 }
 0x919   :  { %v1091_v1 = vpop.f32.mrb[15].mxu0 }
 0x91b   :  { %v1149_v59 = vpop.eup %1148 }
 0x91c   :  { %v700_v60 = vpack.c.bf16 %v1149_v59, %v1149_v59 }
 0x91e   :  { %702 = vrot.lane.b32.xlu0 %v700_v60, %s1168_s4 }
 0x990   :  { %v703_v3 = vpop.permute.xlu0 %702 }
 0x991   :  { %1081 = vmatmul.mubr.msk.bf16.vlgmr.msra.gmra.mrb[12].mxu1 %vm327_vm5, %v703_v3 }
 0x992   :  { %1093 = vmatpush3.bf16.msra.mxu1 %v1334_v10  ;;  %1096 = vmatprep.mubr.msk.bf16.mxu1 %vm1164_vm0, %v1163_v2  ;;  %vm69_vm0 = vcmp.gt.f32.partialorder %v1312_v40, 0.5 }
 0x993   :  { %1094 = vmatprep.subr.bf16.mxu1 %v1163_v2 }
 0x996   :  { %1095 = vmatpush3.bf16.msra.mxu1 %v1340_v11 }
 0xa64   :  { %v753_v5 = vpop.f32.mrb[12].mxu1 }
 0xa65   :  { %v809_v6 = vadd.f32 %v808_v61, %v753_v5  ;;  %v1082_v7 = vpop.f32.mrb[13].mxu1 }
 0xa66   :  { %v756_v8 = vpop.f32.mrb[14].mxu1 }
 0xa67   :  { %v818_v12 = vadd.f32 %v817_v4, %v809_v6  ;;  %v1083_v13 = vpop.f32.mrb[15].mxu1 }
 0xa69   :  { %1150 = vtanh.f32 %v818_v12  ;;  %v1012_v10 = vmul.f32 -1.442695, %v818_v12 }
 0xa6b   :  { %1152 = vpow2.f32 %v1012_v10 }
 0xa73   :  { %v1151_v15 = vpop.eup %1150 }
 0xa74   :  { %828 = vrot.lane.b32.xlu1 %v1151_v15, %s1166_s6 }
 0xa75   :  { %v1153_v16 = vpop.eup %1152 }
 0xa76   :  { %v822_v2 = vadd.f32 1.0, %v1153_v16 }
 0xa78   :  { %1154 = vrcp.f32 %v822_v2 }
 0xa82   :  { %v1155_v11 = vpop.eup %1154 }
 0xa83   :  { %v826_v18 = vmul.f32 %v1155_v11, %v71_v51 }
 0xae6   :  { %v829_v17 = vpop.permute.xlu1 %828 }
 0xae7   :  { %v831_v38 = vmul.f32 %v1155_v11, %v829_v17 }
 0xae9   :  { %833 = vrot.lane.b32.xlu1 %v831_v38, %s1167_s14 }
 0xb5b   :  { %v834_v19 = vpop.permute.xlu1 %833 }
 0xb5c   :  { %v836_v20 = vadd.f32 %v834_v19, %v826_v18 }
 0xb5e   :  { %1156 = vtanh.f32 %v836_v20 }
 0xb68   :  { %v1157_v21 = vpop.eup %1156 }
 0xb69   :  { %839 = vrot.lane.b32.xlu0 %v1157_v21, %s1166_s6 }
 0xb6d   :  { %890 = vrot.lane.b32.xlu0 %v1315_v42, %s1168_s4  ;;  %v894_v42 = vsel %vm69_vm0, 1, %v1162_v0 }
 0xb6e   :  { %v898_v34 = vrot.slane %v894_v42, %v1362_v23 }
 0xb70   :  { %vm1489_vm1 = vcmp.eq.s32.totalorder %v898_v34, 1 }
 0xbdb   :  { %v840_v22 = vpop.permute.xlu0 %839 }
 0xbdc   :  { %v842_v24 = vmul.f32 %v1155_v11, %v840_v22 }
 0xbde   :  { %v843_v25 = vpack.c.bf16 %v842_v24, %v842_v24 }
 0xbdf   :  { %v891_v27 = vpop.permute.xlu0 %890 }
 0xbe0   :  { %845 = vrot.lane.b32.xlu1 %v843_v25, %s1167_s14 }
 0xc52   :  { %v846_v26 = vpop.permute.xlu1 %845 }
 0xc53   :  { %1097 = vmatmul.mubr.msk.bf16.vlgmr.msra.gmra.mrb[16].mxu1 %vm327_vm5, %v846_v26 }
 0xd26   :  { %v884_v28 = vpop.f32.mrb[16].mxu1 }
 0xd27   :  { %v893_v29 = vadd.f32 %v891_v27, %v884_v28  ;;  %v1098_v30 = vpop.f32.mrb[17].mxu1 }
 0xd28   :  { %v887_v31 = vpop.f32.mrb[18].mxu1 }
 0xd29   :  { %901 = vrot.lane.b32.xlu1 %v893_v29, %s1166_s6  ;;  %v1099_v32 = vpop.f32.mrb[19].mxu1 }
 0xd9b   :  { %v902_v36 = vpop.permute.xlu1 %901 }
 0xd9c   :  { %v904_v37 = vsel %vm1489_vm1, %v902_v36, -inf }
 0xd9d   :  { %v905_v39 = vsel %vm612_vm15, %v904_v37, -inf }
 0xd9e   :  { %906 = vmax.xlane.f32.xlu0 %v905_v39 }
 0xdb4   :  { %923 = vrot.lane.b32.xlu0 %v893_v29, %s1168_s4 }
 0xe2b   :  { %v907_v41 = vpop.xlane.xlu0 %906 }
 0xe2c   :  { %v908_v43 = vsub.f32 %v893_v29, %v907_v41 }
 0xe2e   :  { %v909_v40 = vmul.f32 1.442695, %v908_v43 }
 0xe2f   :  { %v924_v44 = vpop.permute.xlu0 %923 }
 0xe30   :  { %1158 = vpow2.f32 %v909_v40  ;;  %v926_v0 = vsel %vm1489_vm1, %v924_v44, 0.0 }
 0xe31   :  { %932 = vrot.lane.b32.xlu0 %v926_v0, %s1168_s4 }
 0xe35   :  { %937 = vrot.lane.b32.xlu0 %v1350_v14, %s1166_s6 }
 0xe3a   :  { %v1159_v23 = vpop.eup %1158 }
 0xe3b   :  { %912 = vrot.lane.b32.xlu1 %v1159_v23, %s1166_s6 }
 0xea3   :  { %v933_v14 = vpop.permute.xlu0 %932 }
 0xea7   :  { %v938_v58 = vpop.permute.xlu0 %937 }
 0xea8   :  { %v952_v60 = vsel %vm327_vm5, %v1441_v45, %v938_v58 }
 0xead   :  { %v913_v46 = vpop.permute.xlu1 %912 }
 0xeae   :  { %v915_v47 = vsel %vm1489_vm1, %v913_v46, 0.0 }
 0xeaf   :  { %v916_v48 = vsel %vm612_vm15, %v915_v47, 0.0 }
 0xeb0   :  { %917 = vadd.xlane.f32.xlu1 %v916_v48 }
 0xf3d   :  { %v918_v49 = vpop.xlane.xlu1 %917 }
 0xf3e   :  { %1160 = vlog2.f32 %v918_v49 }
 0xf48   :  { %v1161_v50 = vpop.eup %1160 }
 0xf49   :  { %v920_v51 = vmul.f32 0.6931472, %v1161_v50 }
 0xf4b   :  { %v921_v52 = vadd.f32 %v920_v51, %v907_v41 }
 0xf4d   :  { %v922_v53 = vsub.f32 %v893_v29, %v921_v52 }
 0xf4f   :  { %928 = vrot.lane.b32.xlu1 %v922_v53, %s1166_s6 }
 0xf53   :  { %941 = vrot.lane.b32.xlu1 %v1328_v9, %s1167_s14 }
 0xf57   :  { %949 = vrot.lane.b32.xlu1 %v842_v24, %s1167_s14 }
 0xfc1   :  { %v929_v54 = vpop.permute.xlu1 %928 }
 0xfc2   :  { %v935_v55 = vsel %vm1489_vm1, %v929_v54, %v933_v14 }
 0xfc3   :  { %945 = vrot.lane.b32.xlu0 %v935_v55, %s1168_s4 }
 0xfc5   :  { %v942_v56 = vpop.permute.xlu1 %941 }
 0xfc6   :  { %v954_v9 = vsel %vm953_vm2, %v952_v60, %v942_v56 }
 0xfc9   :  { %v950_v57 = vpop.permute.xlu1 %949 }
 0xfca   :  { %v957_v59 = vsel %vm327_vm5, %v950_v57, %v836_v20 }
 0xfcb   :  { %v958_v62 = vsel %vm953_vm2, %v957_v59, 0.0 }
0x1035   :  { %v946_v61 = vpop.permute.xlu0 %945 }
0x1036   :  { %v956_v63 = vsel %vm955_vm3, %v954_v9, %v946_v61 }
0x1037   :  { %v961_v1 = vcombine.low %v956_v63, %v958_v62 }
0x1039   :  { %1014 = vst.sshfl [vmem:[%s1526_s7] sm:$0x33 pattern:$0x76325410] %v961_v1 }

</bundles_post_ra>
